<compile_context>
chip_gen: v7x
topology: tpu7x:2x2x1
jax: 0.10.0
libtpu: 0.0.40
codegen_flags: <defaults>
</compile_context>

<pallas_src>
import math

import jax
import jax.numpy as jnp
from jax.experimental import pallas as pl
from jax.experimental.pallas import tpu as pltpu


def _round_up(x, m):
    return ((x + m - 1) // m) * m


# 32 MiB scoped VMEM: far above what the ~2 MiB/step tiles need, and safely
# below physical VMEM on v5e/v6e (128 MiB) and v7x (64 MiB).
_VMEM_LIMIT = 32 * 1024 * 1024


# ------------- dense projection: out = lhs @ W + b (row-tiled) --------------
def _projection_kernel(lhs_ref, w_ref, b_ref, out_ref):
    out_ref[...] = (
        jnp.dot(lhs_ref[...], w_ref[...], preferred_element_type=jnp.float32)
        + b_ref[...]
    ).astype(out_ref.dtype)


# ------ block-sparse aggregation: out = adj @ rhs + b (tile-skipping) -------
def _aggregate_kernel(col_idx_ref, ntiles_ref, adj_ref, rhs_ref, b_ref,
                      out_ref, acc_ref):
    i = pl.program_id(0)
    k = pl.program_id(1)

    @pl.when(k == 0)
    def _():
        acc_ref[...] = jnp.zeros_like(acc_ref)

    # Only accumulate real (nonzero) adjacency tiles; padded slots repeat the
    # previous tile index so their DMA is deduped and their compute skipped.
    @pl.when(k < ntiles_ref[i])
    def _():
        acc_ref[...] += jnp.dot(adj_ref[...], rhs_ref[...],
                                preferred_element_type=jnp.float32)

    @pl.when(k == pl.num_programs(1) - 1)
    def _():
        out_ref[...] = (acc_ref[...] + b_ref[...]).astype(out_ref.dtype)


def graph_convolution(adjacency, input_feature, weight, bias=None, *,
                      compute_dtype=jnp.bfloat16):
    """L @ X @ Theta + b with two tiled Pallas TPU kernels.

    Operands are streamed in `compute_dtype` (bf16 by default); all matmul
    accumulation and the bias add stay f32.  Pass compute_dtype=jnp.float32 if
    you need to track a pure-f32 reference more tightly.
    """
    n, d_in = input_feature.shape
    d_in_w, d_out = weight.shape
    assert d_in_w == d_in
    assert adjacency.shape == (n, n)
    if bias is None:
        bias = jnp.zeros((d_out,), dtype=jnp.float32)

    # Tile selection: 512 tiles hit ~85% of HBM roofline and cut per-step
    # overhead, but keep >= 2 row tiles so the "parallel" axis can be sharded
    # across v7x's two TensorCores (harmless on v5e/v6e).
    tile = 512
    while tile > 128 and _round_up(n, tile) // tile < 2:
        tile //= 2
    tm = tk = tile
    n_pad = _round_up(n, tm)

    # Cast first, then pad only if needed (avoids extra full-N^2 HBM passes).
    adj_c = adjacency.astype(compute_dtype)
    x_c = input_feature.astype(compute_dtype)
    w_c = weight.astype(compute_dtype)
    if n_pad != n:
        adj_c = jnp.pad(adj_c, ((0, n_pad - n), (0, n_pad - n)))
        x_c = jnp.pad(x_c, ((0, n_pad - n), (0, 0)))
    b_row = bias.astype(jnp.float32).reshape(1, d_out)

    num_rt = n_pad // tm
    num_ct = n_pad // tk
    itemsize = jnp.dtype(compute_dtype).itemsize

    # ---- host-side block-sparsity metadata (nonzero adjacency tiles).  For a
    # ---- real sparse adjacency this is built once from the sparse format. ----
    tile_nz = jnp.any(adj_c.reshape(num_rt, tm, num_ct, tk) != 0, axis=(1, 3))
    ntiles = jnp.sum(tile_nz, axis=1).astype(jnp.int32)            # (num_rt,)
    max_nt = max(int(jnp.max(ntiles)), 1)
    col_ar = jnp.broadcast_to(
        jnp.arange(num_ct, dtype=jnp.int32)[None, :], tile_nz.shape)
    keys = jnp.where(tile_nz, col_ar, jnp.int32(num_ct))
    col_idx = jnp.sort(keys, axis=1)[:, :max_nt]
    slot = jnp.arange(max_nt, dtype=jnp.int32)[None, :]
    last = jnp.maximum(ntiles - 1, 0)[:, None]
    col_idx = jnp.take_along_axis(col_idx, jnp.minimum(slot, last), axis=1)
    col_idx = jnp.minimum(col_idx, num_ct - 1).astype(jnp.int32)   # stay in-range
    nnz_tiles = int(jnp.sum(ntiles))

    def projection(lhs, out_dtype, bias2d):
        m, d1 = lhs.shape
        d2 = w_c.shape[1]
        return pl.pallas_call(
            _projection_kernel,
            out_shape=jax.ShapeDtypeStruct((m, d2), out_dtype),
            grid_spec=pltpu.PrefetchScalarGridSpec(
                num_scalar_prefetch=0,
                grid=(m // tm,),
                in_specs=[
                    pl.BlockSpec((tm, d1), lambda i: (i, 0)),
                    pl.BlockSpec((d1, d2), lambda i: (0, 0)),
                    pl.BlockSpec((1, d2), lambda i: (0, 0)),
                ],
                out_specs=pl.BlockSpec((tm, d2), lambda i: (i, 0)),
            ),
            compiler_params=pltpu.CompilerParams(
                dimension_semantics=("parallel",),
                vmem_limit_bytes=_VMEM_LIMIT,
            ),
            cost_estimate=pl.CostEstimate(
                flops=2 * m * d1 * d2,
                transcendentals=0,
                bytes_accessed=(m * d1 + d1 * d2) * itemsize
                + m * d2 * jnp.dtype(out_dtype).itemsize + d2 * 4,
            ),
        )(lhs, w_c, bias2d)

    def aggregation(rhs, out_dtype, bias2d):
        d_feat = rhs.shape[1]
        return pl.pallas_call(
            _aggregate_kernel,
            out_shape=jax.ShapeDtypeStruct((n_pad, d_feat), out_dtype),
            grid_spec=pltpu.PrefetchScalarGridSpec(
                num_scalar_prefetch=2,          # col_idx, ntiles -> SMEM
                grid=(num_rt, max_nt),
                in_specs=[
                    # adjacency tile picked by the prefetched tile list
                    pl.BlockSpec((tm, tk), lambda i, k, ci, nt: (i, ci[i, k])),
                    # matching rhs (features / support) row-tile
                    pl.BlockSpec((tk, d_feat),
                                 lambda i, k, ci, nt: (ci[i, k], 0)),
                    pl.BlockSpec((1, d_feat), lambda i, k, ci, nt: (0, 0)),
                ],
                out_specs=pl.BlockSpec((tm, d_feat),
                                       lambda i, k, ci, nt: (i, 0)),
                scratch_shapes=[pltpu.VMEM((tm, d_feat), jnp.float32)],
            ),
            compiler_params=pltpu.CompilerParams(
                dimension_semantics=("parallel", "arbitrary"),
                vmem_limit_bytes=_VMEM_LIMIT,
            ),
            cost_estimate=pl.CostEstimate(
                flops=2 * nnz_tiles * tm * tk * d_feat,
                transcendentals=0,
                bytes_accessed=nnz_tiles * tm * tk * itemsize
                + num_rt * max_nt * tk * d_feat * itemsize
                + n_pad * d_feat * jnp.dtype(out_dtype).itemsize
                + d_feat * 4,
            ),
        )(col_idx, ntiles, adj_c, rhs, bias2d)

    if d_in <= d_out:
        # (adj @ X) @ W: the O(N^2) matmul streams the narrower feature matrix.
        agg = aggregation(x_c, compute_dtype, jnp.zeros((1, d_in), jnp.float32))
        out = projection(agg, jnp.float32, b_row)
    else:
        support = projection(x_c, compute_dtype,
                             jnp.zeros((1, d_out), jnp.float32))
        out = aggregation(support, jnp.float32, b_row)

    return out[:n, :d_out]


if __name__ == "__main__":
    N = 512        # number of graph nodes
    D_IN = 64      # input feature dim
    D_OUT = 128    # output feature dim

    key = jax.random.PRNGKey(0)
    k_adj, k_x, k_w, k_b = jax.random.split(key, 4)

    # Synthetic ~10%-dense normalized adjacency, with one exactly-zero
    # tile-aligned block so the block-sparse skip path is exercised.
    adj_raw = jax.random.uniform(k_adj, (N, N), dtype=jnp.float32)
    adj = jnp.where(adj_raw > 0.9, adj_raw, 0.0)
    adj = adj.at[: N // 2, N // 2:].set(0.0)
    adj = adj + jnp.eye(N, dtype=jnp.float32)            # self loops
    adj = adj / jnp.sum(adj, axis=1, keepdims=True)      # row-normalize

    x = jax.random.normal(k_x, (N, D_IN), dtype=jnp.float32)

    # Kaiming-uniform-style init (as in reset_parameters); nonzero bias so the
    # bias path is actually tested.
    bound = math.sqrt(6.0 / D_OUT)
    weight = jax.random.uniform(
        k_w, (D_IN, D_OUT), minval=-bound, maxval=bound, dtype=jnp.float32)
    bias = 0.1 * jax.random.normal(k_b, (D_OUT,), dtype=jnp.float32)

    out = graph_convolution(adj, x, weight, bias)
    out = jax.block_until_ready(out)
    assert out.shape == (N, D_OUT)

    # Reference follows the same bf16-operand / f32-accumulate path the kernel
    # takes (d_in <= d_out -> re-associated (adj @ X) @ W).
    cd = jnp.bfloat16
    agg_ref = jnp.dot(adj.astype(cd), x.astype(cd),
                      preferred_element_type=jnp.float32).astype(cd)
    ref = jnp.dot(agg_ref, weight.astype(cd),
                  preferred_element_type=jnp.float32) + bias[None, :]
    max_err = float(jnp.max(jnp.abs(out - ref)))
    assert jnp.allclose(out, ref, atol=2e-2, rtol=2e-2), (
        f"mismatch vs reference (max abs err {max_err})")

    print("KERNEL_OK")
</pallas_src>

<mosaic_0001>
module attributes {stable_mosaic.version = 11 : i64} {
  func.func @_aggregate_kernel(%arg0: i32, %arg1: i32, %arg2: memref<2x2xi32, #tpu.memory_space<smem>>, %arg3: memref<2xi32, #tpu.memory_space<smem>>, %arg4: memref<256x256xbf16, #tpu.memory_space<vmem>>, %arg5: memref<256x64xbf16, #tpu.memory_space<vmem>>, %arg6: memref<1x64xf32, #tpu.memory_space<vmem>>, %arg7: memref<256x64xbf16, #tpu.memory_space<vmem>>, %arg8: memref<256x64xf32, #tpu.memory_space<vmem>>) attributes {dimension_semantics = [#tpu.dimension_semantics<parallel>, #tpu.dimension_semantics<arbitrary>], iteration_bounds = array<i64: 2, 2>, scalar_prefetch = 2 : i64, scratch_operands = 1 : i64, tpu.core_type = #tpu.core_type<tc>, window_params = [{transform_indices = @transform_0, window_bounds = array<i64: 256, 256>}, {transform_indices = @transform_1, window_bounds = array<i64: 256, 64>}, {pipeline_mode = #tpu.pipeline_mode<synchronous>, transform_indices = @transform_2, window_bounds = array<i64: 1, 64>}, {transform_indices = @transform_3, window_bounds = array<i64: 256, 64>}]} {
    %c0_i32 = arith.constant 0 : i32
    %0 = arith.cmpi eq, %arg1, %c0_i32 : i32
    %1 = arith.extui %0 : i1 to i32
    %c0_i32_0 = arith.constant 0 : i32
    %2 = arith.cmpi ne, %1, %c0_i32_0 : i32
    scf.if %2 {
      %cst = arith.constant 0.000000e+00 : f32
      %11 = vector.broadcast %cst : f32 to vector<256x64xf32>
      %c0 = arith.constant 0 : index
      %c0_3 = arith.constant 0 : index
      %12 = vector.load %arg8[%c0, %c0_3] : memref<256x64xf32, #tpu.memory_space<vmem>>, vector<256x64xf32>
      tpu.vector_store %arg8[%c0, %c0_3], %11 {strides = array<i32>} : memref<256x64xf32, #tpu.memory_space<vmem>>, vector<256x64xf32>,
    } else {
    }
    %3 = arith.index_cast %arg0 : i32 to index
    %4 = memref.load %arg3[%3] : memref<2xi32, #tpu.memory_space<smem>>
    %5 = arith.cmpi slt, %arg1, %4 : i32
    %6 = arith.extui %5 : i1 to i32
    %c0_i32_1 = arith.constant 0 : i32
    %7 = arith.cmpi ne, %6, %c0_i32_1 : i32
    scf.if %7 {
      %c0 = arith.constant 0 : index
      %c0_3 = arith.constant 0 : index
      %11 = vector.load %arg8[%c0, %c0_3] : memref<256x64xf32, #tpu.memory_space<vmem>>, vector<256x64xf32>
      %c0_4 = arith.constant 0 : index
      %c0_5 = arith.constant 0 : index
      %12 = vector.load %arg4[%c0_4, %c0_5] : memref<256x256xbf16, #tpu.memory_space<vmem>>, vector<256x256xbf16>
      %c0_6 = arith.constant 0 : index
      %c0_7 = arith.constant 0 : index
      %13 = vector.load %arg5[%c0_6, %c0_7] : memref<256x64xbf16, #tpu.memory_space<vmem>>, vector<256x64xbf16>
      %cst = arith.constant dense<0.000000e+00> : vector<256x64xf32>
      %14 = tpu.matmul %12, %13, %cst {dimension_numbers = #tpu.dot_dimension_numbers<[1], [0], [0], [1], [0, 0, 1, 1], [], []>} : vector<256x256xbf16>, vector<256x64xbf16>, vector<256x64xf32> -> vector<256x64xf32>
      %15 = arith.addf %11, %14 : vector<256x64xf32>
      %c0_8 = arith.constant 0 : index
      %c0_9 = arith.constant 0 : index
      %16 = vector.load %arg8[%c0_8, %c0_9] : memref<256x64xf32, #tpu.memory_space<vmem>>, vector<256x64xf32>
      tpu.vector_store %arg8[%c0_8, %c0_9], %15 {strides = array<i32>} : memref<256x64xf32, #tpu.memory_space<vmem>>, vector<256x64xf32>,
    } else {
    }
    %c1_i32 = arith.constant 1 : i32
    %8 = arith.cmpi eq, %arg1, %c1_i32 : i32
    %9 = arith.extui %8 : i1 to i32
    %c0_i32_2 = arith.constant 0 : i32
    %10 = arith.cmpi ne, %9, %c0_i32_2 : i32
    scf.if %10 {
      %c0 = arith.constant 0 : index
      %c0_3 = arith.constant 0 : index
      %11 = vector.load %arg8[%c0, %c0_3] : memref<256x64xf32, #tpu.memory_space<vmem>>, vector<256x64xf32>
      %c0_4 = arith.constant 0 : index
      %c0_5 = arith.constant 0 : index
      %12 = vector.load %arg6[%c0_4, %c0_5] : memref<1x64xf32, #tpu.memory_space<vmem>>, vector<1x64xf32>
      %13 = vector.broadcast %12 : vector<1x64xf32> to vector<256x64xf32>
      %14 = arith.addf %11, %13 : vector<256x64xf32>
      %15 = arith.truncf %14 : vector<256x64xf32> to vector<256x64xbf16>
      %c0_6 = arith.constant 0 : index
      %c0_7 = arith.constant 0 : index
      %16 = vector.load %arg7[%c0_6, %c0_7] : memref<256x64xbf16, #tpu.memory_space<vmem>>, vector<256x64xbf16>
      tpu.vector_store %arg7[%c0_6, %c0_7], %15 {strides = array<i32>} : memref<256x64xbf16, #tpu.memory_space<vmem>>, vector<256x64xbf16>,
    } else {
    }
    return
  }
  func.func @transform_0(%arg0: i32, %arg1: i32, %arg2: memref<2x2xi32, #tpu.memory_space<smem>>, %arg3: memref<2xi32, #tpu.memory_space<smem>>) -> (i32, i32) {
    %0 = arith.index_cast %arg0 : i32 to index
    %1 = arith.index_cast %arg1 : i32 to index
    %2 = memref.load %arg2[%0, %1] : memref<2x2xi32, #tpu.memory_space<smem>>
    %c0_i32 = arith.constant 0 : i32
    return %arg0, %2 : i32, i32
  }
  func.func @transform_1(%arg0: i32, %arg1: i32, %arg2: memref<2x2xi32, #tpu.memory_space<smem>>, %arg3: memref<2xi32, #tpu.memory_space<smem>>) -> (i32, i32) {
    %0 = arith.index_cast %arg0 : i32 to index
    %1 = arith.index_cast %arg1 : i32 to index
    %2 = memref.load %arg2[%0, %1] : memref<2x2xi32, #tpu.memory_space<smem>>
    %c0_i32 = arith.constant 0 : i32
    %c0_i32_0 = arith.constant 0 : i32
    return %2, %c0_i32 : i32, i32
  }
  func.func @transform_2(%arg0: i32, %arg1: i32, %arg2: memref<2x2xi32, #tpu.memory_space<smem>>, %arg3: memref<2xi32, #tpu.memory_space<smem>>) -> (i32, i32) {
    %c0_i32 = arith.constant 0 : i32
    %c0_i32_0 = arith.constant 0 : i32
    %c0_i32_1 = arith.constant 0 : i32
    return %c0_i32, %c0_i32_0 : i32, i32
  }
  func.func @transform_3(%arg0: i32, %arg1: i32, %arg2: memref<2x2xi32, #tpu.memory_space<smem>>, %arg3: memref<2xi32, #tpu.memory_space<smem>>) -> (i32, i32) {
    %c0_i32 = arith.constant 0 : i32
    %c0_i32_0 = arith.constant 0 : i32
    return %arg0, %c0_i32 : i32, i32
  }
}

</mosaic_0001>

<bundles_post_ra>
// kernel: tpu_custom_call.1
= control target key start
LH: loop header
LB: loop body
LE: loop exit
PB: predicated region body
PF: predicated region fallthrough
CT: control target
= control target key end

     0   :  { %s2245_s0 = inlined_call_operand.vmem [shape: s32[2,2], index: 0, kind: input, shape index: {}]   ;;  %s2246_s2 = inlined_call_operand.hbm [shape: bf16[512,512], index: 2, kind: input, shape index: {}]   ;;  %s2247_s3 = inlined_call_operand.vmem [shape: bf16[512,64], index: 3, kind: input, shape index: {}]   ;;  %s2248_s4 = inlined_call_operand.vmem [shape: f32[1,64], index: 4, kind: input, shape index: {}]   ;;  %s2249_s5 = inlined_call_operand.vmem [shape: bf16[512,64], index: 5, kind: output, shape index: {}]   ;;  %s2250_s1 = inlined_call_operand.vmem [shape: s32[2], index: 1, kind: input, shape index: {}]  }
   0x1   :  { %s10_s20 = sshll.u32 %s2245_s0, 4  ;;  %s14_s23 = sshll.u32 %s2250_s1, 4  ;;  %s11_s20 = int_to_ptr.vmem [resolvable:$true] %s10_s20  ;;  %s15_s23 = int_to_ptr.vmem [resolvable:$true] %s14_s23 }
   0x2   :  { %s1697_s24 = scalar_lea.vmem %s11_s20, 32  ;;  %p1702_p1 = scmp.lt.s32.totalorder %s11_s20, %s11_s20 }
   0x3   :  { %p1698_p0 = scmp.ne.s32.totalorder %s11_s20, %s1697_s24  ;;  %p1703_p2 = scmp.lt.s32.totalorder %s1697_s24, %s1697_s24 }
   0x5   :  { %p1704_p3 = por %p1703_p2, %p1702_p1 }
   0x7   :  { %p1705_p4 = pnand %p1704_p3, %p1698_p0 }
   0x9   :  { %1708 = shalt.err (!%p1705_p4)  }
   0xa   :  { %s1821_s25 = smov [#allocation4]   ;;  %s1709_s26 = scalar_lea.vmem %s15_s23, 16 }
   0xb   :  { %13 = dma.vmem_to_smem %s11_s20, 32, %s1821_s25, [#allocation3] }
   0xc   :  { %p1710_p5 = scmp.ne.s32.totalorder %s15_s23, %s1709_s26  ;;  %p1714_p6 = scmp.lt.s32.totalorder %s15_s23, %s15_s23 }
   0xd   :  { %p1715_p7 = scmp.lt.s32.totalorder %s1709_s26, %s1709_s26 }
   0xf   :  { %p1716_p8 = por %p1715_p7, %p1714_p6 }
  0x11   :  { %p1717_p9 = pnand %p1716_p8, %p1710_p5 }
  0x13   :  { %1720 = shalt.err (!%p1717_p9)  }
  0x14   :  { %s1822_s0 = smov [#allocation5]  }
  0x15   :  { %17 = dma.vmem_to_smem %s15_s23, 16, %s1822_s0, [#allocation3] }
  0x16   :  { %1783 = dma.done.wait [#allocation3], 48 }
  0x17   :  { %1784 = vsyncadd [#allocation3], 4294967248 }
  0x18   :  { %19 = sfence }
  0x19   :  { %20 = vsyncpa [#allocation7], 0 }
  0x1a   :  { %22 = vsyncpa [#allocation7 + $0x1], 0  ;;  %s1864_s1 = smov 0   ;;  %s1866_s27 = smov 0  }
  0x1b   :  { %s1868_s28 = smov 0   ;;  %s1870_s29 = smov 0  }
  0x1c   :  { %s1872_s30 = smov 0   ;;  %s1874_s6 = smov 0  }
  0x1d   :  { %s1876_s7 = smov 0   ;;  %s1878_s8 = smov 0  }
  0x1e LB: > { %s37_s9 = sadd.s32 1, %s1811_s6  ;;  %s40_s10 = sadd.s32 1, %s1815_s7  ;;  %s1819_s8 = sphi %s1878_s8, %s28_s8   ;;  %s1815_s7 = sphi %s1876_s7, %s2262_s7   ;;  %s1811_s6 = sphi %s1874_s6, %s2261_s6   ;;  %s1807_s30 = sphi %s1872_s30, %s2260_s30   ;;  %s1803_s29 = sphi %s1870_s29, %s2259_s29   ;;  %s1799_s28 = sphi %s1868_s28, %s2258_s28   ;;  %s1795_s27 = sphi %s1866_s27, %s2257_s27   ;;  %s1791_s1 = sphi %s1864_s1, %s2256_s1  }
  0x1f   : > { %p38_p10 = scmp.ge.s32.totalorder %s37_s9, 2  ;;  %s44_s11 = sshra.s32 %s1811_s6, 7 }
  0x20   : > { %s46_s12 = sadd.s32 %s1815_s7, %s44_s11  ;;  %s49_s13 = sand.u32 127, %s1811_s6 }
  0x21   : > { %s2264_s9 = smov (%p38_p10, %s37_s9), 0  ;;  %s2266_s10 = smov (!%p38_p10, %s40_s10), %s1815_s7 }
  0x22   : > { %p42_p11 = scmp.ge.s32.totalorder %s2266_s10, 2  ;;  %s1286_s14 = sshll.u32 %s46_s12, 7 }
  0x23   : > { %s52_s15 = sshra.s32 %s2264_s9, 7  ;;  %s1284_s16 = sadd.s32 4294967295, %s1819_s8  }
  0x24   : > { %s2268_s10 = smov (%p42_p11, %s2266_s10), 0  ;;  %s57_s17 = sand.u32 127, %s2264_s9 }
  0x25   : > { %s50_s18 = sadd.s32 %s1286_s14, %s49_s13  ;;  %s54_s19 = sadd.s32 %s52_s15, %s2268_s10 }
  0x26   : > { %s51_s20 = sld [smem:[#allocation4 + %s50_s18]]  ;;  %s1287_s21 = sshll.u32 %s54_s19, 7 }
  0x27   : > { %s58_s22 = sadd.s32 %s1287_s21, %s57_s17  ;;  %p72_p12 = scmp.ne.s32.totalorder %s1799_s28, %s1795_s27 }
  0x28   : > { %s59_s23 = sld [smem:[#allocation4 + %s58_s22]]  ;;  %p78_p13 = scmp.ne.s32.totalorder %s1795_s27, %s1791_s1 }
  0x29   : > { %p73_p0 = scmp.eq.s32.totalorder %s1819_s8, 0  ;;  %p79_p1 = scmp.eq.s32.totalorder %s1284_s16, 0 }
  0x2a   : > { %s60_s25 = ssub.s32 %s1815_s7, %s2268_s10  ;;  %s194_s26 = sand.u32 1, %s1799_s28  }
  0x2b   : > { %p1923_p2 = por %p79_p1, %p78_p13  ;;  %s65_s0 = sadd.s32 1, %s1799_s28 }
  0x2c   : > { %p74_p3 = por %p73_p0, %p72_p12  ;;  %p1562_p4 = scmp.lt.s32.totalorder %s1819_s8, 4 }
  0x2d   : > { %s2252_s24 = scalar_select %p1923_p2, 1, 0 }
  0x2e   : > { %s61_s11 = ssub.s32 %s51_s20, %s59_s23  ;;  %s1292_s13 = sshll.u32 %s194_s26, 8 }
  0x2f   : > { %s62_s12 = sor.u32 %s61_s11, %s60_s25  ;;  %p1932_p6 = pnand %p1562_p4, %p74_p3 }
  0x30   : > { %p63_p5 = scmp.eq.s32.totalorder %s62_s12, 0  ;;  %s2270_s18 = smov (!%p74_p3, %s50_s18), 0 }
  0x31   : > { %s1552_s14 = scalar_select %p74_p3, [#allocation4], [#allocation8] }
  0x32   : > { %s1937_s15 = scalar_select %p63_p5, %s1799_s28, %s65_s0  }
  0x33   : > { %s2272_s14 = smov (!%p1562_p4, %s1552_s14), [#allocation9]  ;;  %s2274_s18 = smov (!%p1562_p4, %s2270_s18), 0 }
  0x34   : > { %s206_s16 = sld [smem:[%s2272_s14 + %s2274_s18]]  ;;  %p1298_p7 = scmp.ge.s32.totalorder %s1819_s8, 1 }
  0x35   : > { %s198_s17 = scalar_lea.vmem [#allocation6], %s1292_s13  ;;  %p249_p8 = scmp.lt.s32.totalorder %s1819_s8, 5 }
  0x36   : > { %s216_s19 = sshll.u32 %s198_s17, 4  ;;  %s1391_s20 = sshll.u32 %s1815_s7, 7  ;;  %s1946_s19 = int_to_ptr.vmem [resolvable:$true] %s216_s19 }
  0x37   : > { %p1942_p9 = pnand %p1298_p7, %p249_p8  ;;  %s1953_s18 = scalar_lea.sflag [#allocation7], %s194_s26 }
  0x38   : > { %p1723_p11 = pneg %p1932_p6  ;;  %s1726_s17 = scalar_lea.hbm %s2246_s2, 16384 }
  0x3a   : > { %s1295_s22 = sshll.u32 %s206_s16, 1 }
  0x3b   : > { %s213_s23 = sadd.s32 %s1391_s20, %s1295_s22 }
  0x3c   : > { %s1297_s25 = sshll.u32 %s213_s23, 6 }
  0x3d   : > { %s1951_s12 = scalar_lea.hbm %s2246_s2, %s1297_s25 }
  0x3e   : > { %s1721_s13 = scalar_lea.hbm %s1951_s12, 4096  ;;  %p1727_p0 = scmp.lt.u32.totalorder %s1951_s12, %s2246_s2 }
  0x3f   : > { %p1722_p10 = scmp.ne.s32.totalorder %s1951_s12, %s1721_s13  ;;  %p1728_p1 = scmp.lt.u32.totalorder %s1726_s17, %s1721_s13 }
  0x40   : > { %p1730_p4 = scmp.lt.u32.totalorder %s1721_s13, %s1951_s12 }
  0x41   : > { %p1724_p12 = pnand %p1723_p11, %p1722_p10  ;;  %p1729_p3 = por %p1728_p1, %p1727_p0 }
  0x43   : > { %p1725_p13 = pneg %p1724_p12  ;;  %p1731_p5 = por %p1730_p4, %p1729_p3 }
  0x45   : > { %p1732_p7 = pnand %p1731_p5, %p1725_p13 }
  0x47   : > { %1735 = shalt.err (!%p1732_p7)
}
  0x48   : > { %s1736_s26 = scalar_lea.vmem %s1946_s19, 4096  ;;  %s1823_s23 = smov [#allocation6]  }
  0x49   : > { %p1737_p8 = scmp.ne.s32.totalorder %s1946_s19, %s1736_s26  ;;  %s1741_s25 = sshll.u32 %s1823_s23, 4  ;;  %s1742_s25 = int_to_ptr.vmem [resolvable:$false] %s1741_s25 }
  0x4a   : > { %s1743_s0 = scalar_lea.vmem %s1742_s25, 8192  ;;  %p1744_p2 = scmp.lt.s32.totalorder %s1946_s19, %s1742_s25 }
  0x4b   : > { %p1739_p10 = pnand %p1737_p8, %p1723_p11  ;;  %p1745_p0 = scmp.lt.s32.totalorder %s1743_s0, %s1736_s26 }
  0x4d   : > { %p1740_p12 = pneg %p1739_p10  ;;  %p1746_p1 = por %p1745_p0, %p1744_p2 }
  0x4f   : > { %p1747_p3 = pnand %p1746_p1, %p1740_p12 }
  0x51   : > { %1750 = shalt.err (!%p1747_p3)
}
  0x52   : > { %s1824_s11 = smov 256   ;;  %s1825_s13 = smov 128  }
  0x53   : > { %s1826_s14 = smov 8   ;;  %253 = sbr.rel (%p1942_p9) target bundleno = 453 (0x1c5), region = 32 }
  0x54   : > { %1561 = dma.hbm_to_vmem [thread:$0]  (!%p1932_p6), %s1951_s12, 4096, %s1946_s19, %s1953_s18, %s1824_s11, %s1825_s13, %s1826_s14  }
  0x55   : > { %s255_s16 = sand.u32 (!%p1942_p9), 1, %s1795_s27   ;;  %p2255_p2 = scmp.ne.s32.totalorder (!%p1942_p9), %s2252_s24, 0 }
  0x56   : > { %s1299_s17 = sshll.u32 (!%p1942_p9), %s255_s16, 8  ;;  %s256_s20 = scalar_lea.sflag (!%p1942_p9), [#allocation7], %s255_s16 }
  0x57   : > { %s1984_s22 = scalar_lea.vmem (!%p1942_p9), [#allocation6], %s1299_s17 }
  0x5a   : > { %1786 = dma.done.wait (%p2255_p2), %s256_s20, 4096  }
  0x5b   : > { %1788 = vsyncadd (%p2255_p2), %s256_s20, 4294963200  ;;  %s305_s1 = sshra.s32 %s1803_s29, 7  ;;  %s310_s19 = sand.u32 127, %s1803_s29 }
  0x5c   : > { %s307_s21 = sadd.s32 %s1807_s30, %s305_s1  ;;  %s1303_s12 = sshll.u32 %s1807_s30, 5 }
  0x5d   : > { %s1300_s18 = sshll.u32 %s307_s21, 7  ;;  %p328_p6 = scmp.lt.s32.totalorder %s1303_s12, 63 }
  0x5e   : > { %s311_s26 = sadd.s32 %s1300_s18, %s310_s19  ;;  %p1305_p11 = scmp.ne.s32.totalorder %s1803_s29, 0 }
  0x5f   : > { %s312_s23 = sld [smem:[#allocation4 + %s311_s26]]  ;;  %s2276_s12 = smov (!%p328_p6, %s1303_s12), 63  ;;  %vm338_vm0 = vcmask (!%p1305_p11), 523264   ;;  %v1827_v0 = vmov (!%p1305_p11), 0.0  }
  0x60   : > { %s1304_s25 = sshll.u32 %s2276_s12, 2  ;;  %339 = vst.msk [vmem:[#allocation2] sm:$0xff] (!%p1305_p11), %vm338_vm0, %v1827_v0  ;;  %340 = vst.msk [vmem:[#allocation2 + $0x8] sm:$0xff] (!%p1305_p11), %vm338_vm0, %v1827_v0 }
  0x61   : > { %s1997_s13 = scalar_lea.vmem %s2249_s5, %s1304_s25  ;;  %341 = vst.msk [vmem:[#allocation2 + $0x10] sm:$0xff] (!%p1305_p11), %vm338_vm0, %v1827_v0  ;;  %342 = vst.msk [vmem:[#allocation2 + $0x18] sm:$0xff] (!%p1305_p11), %vm338_vm0, %v1827_v0 }
  0x62   : > { %343 = vst.msk [vmem:[#allocation2 + $0x20] sm:$0xff] (!%p1305_p11), %vm338_vm0, %v1827_v0  ;;  %344 = vst.msk [vmem:[#allocation2 + $0x28] sm:$0xff] (!%p1305_p11), %vm338_vm0, %v1827_v0 }
  0x63   : > { %345 = vst.msk [vmem:[#allocation2 + $0x30] sm:$0xff] (!%p1305_p11), %vm338_vm0, %v1827_v0  ;;  %346 = vst.msk [vmem:[#allocation2 + $0x38] sm:$0xff] (!%p1305_p11), %vm338_vm0, %v1827_v0 }
  0x64   : > { %337 = sbr.rel (%p1305_p11) target bundleno = 112 (0x70), region = 40  ;;  %347 = vst.msk [vmem:[#allocation2 + $0x40] sm:$0xff] (!%p1305_p11), %vm338_vm0, %v1827_v0  ;;  %348 = vst.msk [vmem:[#allocation2 + $0x48] sm:$0xff] (!%p1305_p11), %vm338_vm0, %v1827_v0 }
  0x65   : > { %s1301_s24 = sshll.u32 %s312_s23, 5  ;;  %349 = vst.msk [vmem:[#allocation2 + $0x50] sm:$0xff] (!%p1305_p11), %vm338_vm0, %v1827_v0  ;;  %350 = vst.msk [vmem:[#allocation2 + $0x58] sm:$0xff] (!%p1305_p11), %vm338_vm0, %v1827_v0 }
  0x66   : > { %p314_p9 = scmp.lt.s32.totalorder %s1301_s24, 63  ;;  %351 = vst.msk [vmem:[#allocation2 + $0x60] sm:$0xff] (!%p1305_p11), %vm338_vm0, %v1827_v0  ;;  %352 = vst.msk [vmem:[#allocation2 + $0x68] sm:$0xff] (!%p1305_p11), %vm338_vm0, %v1827_v0 }
  0x67   : > { %353 = vst.msk [vmem:[#allocation2 + $0x70] sm:$0xff] (!%p1305_p11), %vm338_vm0, %v1827_v0  ;;  %354 = vst.msk [vmem:[#allocation2 + $0x78] sm:$0xff] (!%p1305_p11), %vm338_vm0, %v1827_v0 }
  0x68   : > { %s2278_s24 = smov (!%p314_p9, %s1301_s24), 63  ;;  %355 = vst.msk [vmem:[#allocation2 + $0x80] sm:$0xff] (!%p1305_p11), %vm338_vm0, %v1827_v0  ;;  %356 = vst.msk [vmem:[#allocation2 + $0x88] sm:$0xff] (!%p1305_p11), %vm338_vm0, %v1827_v0 }
  0x69   : > { %s1302_s14 = sshll.u32 %s2278_s24, 2  ;;  %357 = vst.msk [vmem:[#allocation2 + $0x90] sm:$0xff] (!%p1305_p11), %vm338_vm0, %v1827_v0  ;;  %358 = vst.msk [vmem:[#allocation2 + $0x98] sm:$0xff] (!%p1305_p11), %vm338_vm0, %v1827_v0 }
  0x6a   : > { %s2002_s20 = scalar_lea.vmem %s2247_s3, %s1302_s14  ;;  %359 = vst.msk [vmem:[#allocation2 + $0xa0] sm:$0xff] (!%p1305_p11), %vm338_vm0, %v1827_v0  ;;  %360 = vst.msk [vmem:[#allocation2 + $0xa8] sm:$0xff] (!%p1305_p11), %vm338_vm0, %v1827_v0 }
  0x6b   : > { %361 = vst.msk [vmem:[#allocation2 + $0xb0] sm:$0xff] %vm338_vm0, %v1827_v0  ;;  %362 = vst.msk [vmem:[#allocation2 + $0xb8] sm:$0xff] %vm338_vm0, %v1827_v0 }
  0x6c   : > { %363 = vst.msk [vmem:[#allocation2 + $0xc0] sm:$0xff] %vm338_vm0, %v1827_v0  ;;  %364 = vst.msk [vmem:[#allocation2 + $0xc8] sm:$0xff] %vm338_vm0, %v1827_v0 }
  0x6d   : > { %365 = vst.msk [vmem:[#allocation2 + $0xd0] sm:$0xff] %vm338_vm0, %v1827_v0  ;;  %366 = vst.msk [vmem:[#allocation2 + $0xd8] sm:$0xff] %vm338_vm0, %v1827_v0 }
  0x6e   : > { %367 = vst.msk [vmem:[#allocation2 + $0xe0] sm:$0xff] %vm338_vm0, %v1827_v0  ;;  %368 = vst.msk [vmem:[#allocation2 + $0xe8] sm:$0xff] %vm338_vm0, %v1827_v0 }
  0x6f   : > { %369 = vst.msk [vmem:[#allocation2 + $0xf0] sm:$0xff] %vm338_vm0, %v1827_v0  ;;  %370 = vst.msk [vmem:[#allocation2 + $0xf8] sm:$0xff] %vm338_vm0, %v1827_v0 }
  0x70 PF: > { %s371_s1 = sld [smem:[#allocation5 + %s1807_s30]] }
  0x76   : > { %p1306_p13 = scmp.ge.s32.totalorder %s1803_s29, %s371_s1 }
  0x77   : > { %v1633_v1 = vld [vmem:[%s2002_s20 + $0x40] sm:$0xff] (!%p1306_p13)   ;;  %v1635_v3 = vld [vmem:[%s2002_s20 + $0x48] sm:$0xff] (!%p1306_p13)   ;;  %v1637_v5 = vld [vmem:[%s2002_s20 + $0x50] sm:$0xff] (!%p1306_p13)   ;;  %vm921_vm1 = vcmask (!%p1306_p13), 523264  }
  0x78   : > { %375 = sbr.rel (%p1306_p13) target bundleno = 428 (0x1ac), region = 44  ;;  %v1634_v2 = vld [vmem:[%s2002_s20] sm:$0xff] (!%p1306_p13)   ;;  %1424 = vmatprep.subr.bf16.mxu0 (!%p1306_p13), %v1633_v1  ;;  %1536 = vmatprep.subr.bf16.mxu1 (!%p1306_p13), %v1633_v1  ;;  %v1636_v4 = vld [vmem:[%s2002_s20 + $0x8] sm:$0xff] (!%p1306_p13)   ;;  %v1638_v6 = vld [vmem:[%s2002_s20 + $0x10] sm:$0xff] (!%p1306_p13)  }
  0x79   : > { %1425 = vmatpush3.bf16.msra.mxu0 (!%p1306_p13), %v1634_v2  ;;  %1544 = vmatpush3.bf16.msra.mxu1 (!%p1306_p13), %v1634_v2  ;;  %v1639_v7 = vld [vmem:[%s2002_s20 + $0x58] sm:$0xff] (!%p1306_p13)   ;;  %v1641_v9 = vld [vmem:[%s2002_s20 + $0x60] sm:$0xff] (!%p1306_p13)   ;;  %v1643_v11 = vld [vmem:[%s2002_s20 + $0x68] sm:$0xff] (!%p1306_p13)  }
  0x7a   : > { %1426 = vmatprep.subr.bf16.mxu0 (!%p1306_p13), %v1635_v3  ;;  %1537 = vmatprep.subr.bf16.mxu1 (!%p1306_p13), %v1635_v3  ;;  %v1640_v8 = vld [vmem:[%s2002_s20 + $0x18] sm:$0xff] (!%p1306_p13)   ;;  %v1642_v10 = vld [vmem:[%s2002_s20 + $0x20] sm:$0xff] (!%p1306_p13)   ;;  %v1644_v14 = vld [vmem:[%s2002_s20 + $0x28] sm:$0xff] (!%p1306_p13)  }
  0x7b   : > { %v1651_v12 = vld [vmem:[%s1984_s22 + $0x4] ss:$8 sps:$4 sm:$0xff] (!%p1306_p13)   ;;  %v1645_v15 = vld [vmem:[%s2002_s20 + $0x70] sm:$0xff] (!%p1306_p13)   ;;  %v1647_v17 = vld [vmem:[%s2002_s20 + $0x78] sm:$0xff] (!%p1306_p13)  }
  0x7c   : > { %v1654_v13 = vld [vmem:[%s1984_s22 + $0x84] ss:$8 sps:$4 sm:$0xff] (!%p1306_p13)   ;;  %760 = vmatprep.mubr.bf16.mxu0 (!%p1306_p13), %v1651_v12  ;;  %v1646_v16 = vld [vmem:[%s2002_s20 + $0x30] sm:$0xff] (!%p1306_p13)   ;;  %v1648_v18 = vld [vmem:[%s2002_s20 + $0x38] sm:$0xff] (!%p1306_p13)  }
  0x7d   : > { %1427 = vmatpush3.bf16.msra.mxu0 (!%p1306_p13), %v1636_v4  ;;  %1545 = vmatpush3.bf16.msra.mxu1 (!%p1306_p13), %v1636_v4  ;;  %v1649_v19 = vld [vmem:[%s1984_s22] ss:$8 sps:$4 sm:$0xff] (!%p1306_p13)   ;;  %v1655_v21 = vld [vmem:[%s1984_s22 + $0x14] ss:$8 sps:$4 sm:$0xff] (!%p1306_p13)   ;;  %v1659_v23 = vld [vmem:[%s1984_s22 + $0x10] ss:$8 sps:$4 sm:$0xff] (!%p1306_p13)  }
  0x7e   : > { %1428 = vmatprep.subr.bf16.mxu0 (!%p1306_p13), %v1637_v5  ;;  %1538 = vmatprep.subr.bf16.mxu1 (!%p1306_p13), %v1637_v5  ;;  %v1652_v20 = vld [vmem:[%s1984_s22 + $0x80] ss:$8 sps:$4 sm:$0xff] (!%p1306_p13)   ;;  %v1657_v22 = vld [vmem:[%s1984_s22 + $0x94] ss:$8 sps:$4 sm:$0xff] (!%p1306_p13)   ;;  %v1660_v24 = vld [vmem:[%s1984_s22 + $0x90] ss:$8 sps:$4 sm:$0xff] (!%p1306_p13)  }
  0x7f   : > { %824 = vmatprep.mubr.bf16.mxu1 %v1654_v13  ;;  %v1661_v25 = vld [vmem:[%s1984_s22 + $0x24] ss:$8 sps:$4 sm:$0xff]   ;;  %v1665_v27 = vld [vmem:[%s1984_s22 + $0x20] ss:$8 sps:$4 sm:$0xff]   ;;  %v1667_v29 = vld [vmem:[%s1984_s22 + $0x34] ss:$8 sps:$4 sm:$0xff]  }
  0x80   : > { %v1663_v26 = vld [vmem:[%s1984_s22 + $0xa4] ss:$8 sps:$4 sm:$0xff]   ;;  %v1666_v28 = vld [vmem:[%s1984_s22 + $0xa0] ss:$8 sps:$4 sm:$0xff]   ;;  %v1669_v30 = vld [vmem:[%s1984_s22 + $0xb4] ss:$8 sps:$4 sm:$0xff]  }
  0x81   : > { %1429 = vmatpush3.bf16.msra.mxu0 %v1638_v6  ;;  %1546 = vmatpush3.bf16.msra.mxu1 %v1638_v6  ;;  %v1671_v31 = vld [vmem:[%s1984_s22 + $0x30] ss:$8 sps:$4 sm:$0xff]   ;;  %v1673_v33 = vld [vmem:[%s1984_s22 + $0x44] ss:$8 sps:$4 sm:$0xff]   ;;  %v1677_v35 = vld [vmem:[%s1984_s22 + $0x40] ss:$8 sps:$4 sm:$0xff]  }
  0x82   : > { %1430 = vmatprep.subr.bf16.mxu0 %v1639_v7  ;;  %1539 = vmatprep.subr.bf16.mxu1 %v1639_v7  ;;  %v1672_v32 = vld [vmem:[%s1984_s22 + $0xb0] ss:$8 sps:$4 sm:$0xff]   ;;  %v1675_v34 = vld [vmem:[%s1984_s22 + $0xc4] ss:$8 sps:$4 sm:$0xff]   ;;  %v1678_v36 = vld [vmem:[%s1984_s22 + $0xc0] ss:$8 sps:$4 sm:$0xff]  }
  0x83   : > { %v1679_v37 = vld [vmem:[%s1984_s22 + $0x54] ss:$8 sps:$4 sm:$0xff]   ;;  %v1683_v39 = vld [vmem:[%s1984_s22 + $0x50] ss:$8 sps:$4 sm:$0xff]   ;;  %v1685_v41 = vld [vmem:[%s1984_s22 + $0x64] ss:$8 sps:$4 sm:$0xff]  }
  0x84   : > { %v1681_v38 = vld [vmem:[%s1984_s22 + $0xd4] ss:$8 sps:$4 sm:$0xff]   ;;  %v1684_v40 = vld [vmem:[%s1984_s22 + $0xd0] ss:$8 sps:$4 sm:$0xff]   ;;  %v1687_v42 = vld [vmem:[%s1984_s22 + $0xe4] ss:$8 sps:$4 sm:$0xff]  }
  0x85   : > { %1431 = vmatpush3.bf16.msra.mxu0 %v1640_v8  ;;  %1547 = vmatpush3.bf16.msra.mxu1 %v1640_v8  ;;  %v1689_v43 = vld [vmem:[%s1984_s22 + $0x60] ss:$8 sps:$4 sm:$0xff]   ;;  %v1691_v45 = vld [vmem:[%s1984_s22 + $0x74] ss:$8 sps:$4 sm:$0xff]   ;;  %v1695_v47 = vld [vmem:[%s1984_s22 + $0x70] ss:$8 sps:$4 sm:$0xff]  }
  0x86   : > { %1432 = vmatprep.subr.bf16.mxu0 %v1641_v9  ;;  %1540 = vmatprep.subr.bf16.mxu1 %v1641_v9  ;;  %v1690_v44 = vld [vmem:[%s1984_s22 + $0xe0] ss:$8 sps:$4 sm:$0xff]   ;;  %v1693_v46 = vld [vmem:[%s1984_s22 + $0xf4] ss:$8 sps:$4 sm:$0xff]   ;;  %v1696_v48 = vld [vmem:[%s1984_s22 + $0xf0] ss:$8 sps:$4 sm:$0xff]  }
  0x87   : > { %v376_v51 = vld [vmem:[#allocation2] sm:$0xff]  ;;  %v377_v59 = vld [vmem:[#allocation2 + $0x8] sm:$0xff]  ;;  %v378_v7 = vld [vmem:[#allocation2 + $0x10] sm:$0xff] }
  0x88   : > { %v392_v53 = vld [vmem:[#allocation2 + $0x80] sm:$0xff]  ;;  %v393_v61 = vld [vmem:[#allocation2 + $0x88] sm:$0xff]  ;;  %v394_v9 = vld [vmem:[#allocation2 + $0x90] sm:$0xff] }
  0x89   : > { %1433 = vmatpush3.bf16.msra.mxu0 %v1642_v10  ;;  %1548 = vmatpush3.bf16.msra.mxu1 %v1642_v10 }
  0x8a   : > { %1434 = vmatprep.subr.bf16.mxu0 %v1643_v11  ;;  %1541 = vmatprep.subr.bf16.mxu1 %v1643_v11 }
  0x8d   : > { %1435 = vmatpush3.bf16.msra.mxu0 %v1644_v14  ;;  %1549 = vmatpush3.bf16.msra.mxu1 %v1644_v14 }
  0x8e   : > { %1436 = vmatprep.subr.bf16.mxu0 %v1645_v15  ;;  %1542 = vmatprep.subr.bf16.mxu1 %v1645_v15  ;;  %v379_v15 = vld [vmem:[#allocation2 + $0x18] sm:$0xff] }
  0x91   : > { %1437 = vmatpush3.bf16.msra.mxu0 %v1646_v16  ;;  %1550 = vmatpush3.bf16.msra.mxu1 %v1646_v16 }
  0x92   : > { %1438 = vmatprep.subr.bf16.mxu0 %v1647_v17  ;;  %1543 = vmatprep.subr.bf16.mxu1 %v1647_v17  ;;  %v395_v17 = vld [vmem:[#allocation2 + $0x98] sm:$0xff] }
  0x95   : > { %1439 = vmatpush3.bf16.msra.mxu0 %v1648_v18  ;;  %1551 = vmatpush3.bf16.msra.mxu1 %v1648_v18 }
  0x98   : > { %761 = vmatmul.mubr.bf16.vlgmr.msra.gmra.mrb[0].mxu0 %v1649_v19  ;;  %825 = vmatmul.mubr.bf16.vlgmr.msra.gmra.mrb[0].mxu1 %v1652_v20 }
  0x99   : > { %768 = vmatprep.mubr.bf16.mxu0 %v1655_v21  ;;  %832 = vmatprep.mubr.bf16.mxu1 %v1657_v22 }
  0xa0   : > { %769 = vmatmul.mubr.bf16.gmra.mrb[4].mxu0 %v1659_v23  ;;  %833 = vmatmul.mubr.bf16.gmra.mrb[4].mxu1 %v1660_v24 }
  0xa1   : > { %776 = vmatprep.mubr.bf16.mxu0 %v1661_v25  ;;  %840 = vmatprep.mubr.bf16.mxu1 %v1663_v26 }
  0xa8   : > { %777 = vmatmul.mubr.bf16.gmra.mrb[8].mxu0 %v1665_v27  ;;  %841 = vmatmul.mubr.bf16.gmra.mrb[8].mxu1 %v1666_v28  ;;  %v380_v27 = vld [vmem:[#allocation2 + $0x20] sm:$0xff] }
  0xa9   : > { %784 = vmatprep.mubr.bf16.mxu0 %v1667_v29  ;;  %848 = vmatprep.mubr.bf16.mxu1 %v1669_v30  ;;  %v396_v29 = vld [vmem:[#allocation2 + $0xa0] sm:$0xff] }
  0xb0   : > { %785 = vmatmul.mubr.bf16.gmra.mrb[12].mxu0 %v1671_v31  ;;  %849 = vmatmul.mubr.bf16.gmra.mrb[12].mxu1 %v1672_v32 }
  0xb1   : > { %792 = vmatprep.mubr.bf16.mxu0 %v1673_v33  ;;  %856 = vmatprep.mubr.bf16.mxu1 %v1675_v34 }
  0xb8   : > { %793 = vmatmul.mubr.bf16.gmra.mrb[16].mxu0 %v1677_v35  ;;  %857 = vmatmul.mubr.bf16.gmra.mrb[16].mxu1 %v1678_v36  ;;  %v381_v35 = vld [vmem:[#allocation2 + $0x28] sm:$0xff] }
  0xb9   : > { %800 = vmatprep.mubr.bf16.mxu0 %v1679_v37  ;;  %864 = vmatprep.mubr.bf16.mxu1 %v1681_v38  ;;  %v397_v37 = vld [vmem:[#allocation2 + $0xa8] sm:$0xff] }
  0xc0   : > { %801 = vmatmul.mubr.bf16.gmra.mrb[20].mxu0 %v1683_v39  ;;  %865 = vmatmul.mubr.bf16.gmra.mrb[20].mxu1 %v1684_v40 }
  0xc1   : > { %808 = vmatprep.mubr.bf16.mxu0 %v1685_v41  ;;  %872 = vmatprep.mubr.bf16.mxu1 %v1687_v42 }
  0xc8   : > { %809 = vmatmul.mubr.bf16.gmra.mrb[24].mxu0 %v1689_v43  ;;  %873 = vmatmul.mubr.bf16.gmra.mrb[24].mxu1 %v1690_v44 }
  0xc9   : > { %816 = vmatprep.mubr.bf16.mxu0 %v1691_v45  ;;  %880 = vmatprep.mubr.bf16.mxu1 %v1693_v46 }
  0xd0   : > { %817 = vmatmul.mubr.bf16.gmra.mrb[28].mxu0 %v1695_v47  ;;  %881 = vmatmul.mubr.bf16.gmra.mrb[28].mxu1 %v1696_v48  ;;  %v382_v47 = vld [vmem:[#allocation2 + $0x30] sm:$0xff] }
 0x16b   : > { %v1440_v49 = vpop.f32.mrb[0].mxu0  ;;  %v1488_v50 = vpop.f32.mrb[0].mxu1 }
 0x16c   : > { %v1441_v52 = vpop.f32.mrb[1].mxu0  ;;  %v1489_v54 = vpop.f32.mrb[1].mxu1 }
 0x16d   : > { %v1442_v55 = vadd.f32 %v1441_v52, %v1440_v49  ;;  %v1490_v56 = vadd.f32 %v1489_v54, %v1488_v50  ;;  %v1443_v57 = vpop.f32.mrb[2].mxu0  ;;  %v1491_v58 = vpop.f32.mrb[2].mxu1  ;;  %v398_v49 = vld [vmem:[#allocation2 + $0xb0] sm:$0xff] }
 0x16e   : > { %v1444_v60 = vpop.f32.mrb[3].mxu0  ;;  %v1492_v62 = vpop.f32.mrb[3].mxu1 }
 0x16f   : > { %v889_v63 = vadd.f32 %v1442_v55, %v376_v51  ;;  %v905_v0 = vadd.f32 %v1490_v56, %v392_v53  ;;  %v1445_v1 = vadd.f32 %v1444_v60, %v1443_v57  ;;  %v1493_v2 = vadd.f32 %v1492_v62, %v1491_v58  ;;  %v383_v55 = vld [vmem:[#allocation2 + $0x38] sm:$0xff] }
 0x170   : > { %v399_v57 = vld [vmem:[#allocation2 + $0xb8] sm:$0xff] }
 0x171   : > { %922 = vst.msk [vmem:[#allocation2] sm:$0xff] %vm921_vm1, %v889_v63  ;;  %938 = vst.msk [vmem:[#allocation2 + $0x80] sm:$0xff] %vm921_vm1, %v905_v0  ;;  %v890_v3 = vadd.f32 %v1445_v1, %v377_v59  ;;  %v906_v4 = vadd.f32 %v1493_v2, %v393_v61 }
 0x173   : > { %923 = vst.msk [vmem:[#allocation2 + $0x8] sm:$0xff] %vm921_vm1, %v890_v3  ;;  %939 = vst.msk [vmem:[#allocation2 + $0x88] sm:$0xff] %vm921_vm1, %v906_v4  ;;  %v1446_v5 = vpop.f32.mrb[4].mxu0  ;;  %v1494_v6 = vpop.f32.mrb[4].mxu1  ;;  %v384_v3 = vld [vmem:[#allocation2 + $0x40] sm:$0xff] }
 0x174   : > { %v1447_v8 = vpop.f32.mrb[5].mxu0  ;;  %v1495_v10 = vpop.f32.mrb[5].mxu1 }
 0x175   : > { %v1448_v11 = vadd.f32 %v1447_v8, %v1446_v5  ;;  %v1496_v12 = vadd.f32 %v1495_v10, %v1494_v6  ;;  %v1449_v13 = vpop.f32.mrb[6].mxu0  ;;  %v1497_v14 = vpop.f32.mrb[6].mxu1  ;;  %v400_v5 = vld [vmem:[#allocation2 + $0xc0] sm:$0xff] }
 0x176   : > { %v1450_v16 = vpop.f32.mrb[7].mxu0  ;;  %v1498_v18 = vpop.f32.mrb[7].mxu1 }
 0x177   : > { %v891_v19 = vadd.f32 %v1448_v11, %v378_v7  ;;  %v907_v20 = vadd.f32 %v1496_v12, %v394_v9  ;;  %v1451_v21 = vadd.f32 %v1450_v16, %v1449_v13  ;;  %v1499_v22 = vadd.f32 %v1498_v18, %v1497_v14  ;;  %v385_v11 = vld [vmem:[#allocation2 + $0x48] sm:$0xff] }
 0x178   : > { %v401_v13 = vld [vmem:[#allocation2 + $0xc8] sm:$0xff] }
 0x179   : > { %924 = vst.msk [vmem:[#allocation2 + $0x10] sm:$0xff] %vm921_vm1, %v891_v19  ;;  %940 = vst.msk [vmem:[#allocation2 + $0x90] sm:$0xff] %vm921_vm1, %v907_v20  ;;  %v892_v23 = vadd.f32 %v1451_v21, %v379_v15  ;;  %v908_v24 = vadd.f32 %v1499_v22, %v395_v17 }
 0x17b   : > { %925 = vst.msk [vmem:[#allocation2 + $0x18] sm:$0xff] %vm921_vm1, %v892_v23  ;;  %941 = vst.msk [vmem:[#allocation2 + $0x98] sm:$0xff] %vm921_vm1, %v908_v24  ;;  %v1452_v25 = vpop.f32.mrb[8].mxu0  ;;  %v1500_v26 = vpop.f32.mrb[8].mxu1  ;;  %v386_v23 = vld [vmem:[#allocation2 + $0x50] sm:$0xff] }
 0x17c   : > { %v1453_v28 = vpop.f32.mrb[9].mxu0  ;;  %v1501_v30 = vpop.f32.mrb[9].mxu1 }
 0x17d   : > { %v1454_v31 = vadd.f32 %v1453_v28, %v1452_v25  ;;  %v1502_v32 = vadd.f32 %v1501_v30, %v1500_v26  ;;  %v1455_v33 = vpop.f32.mrb[10].mxu0  ;;  %v1503_v34 = vpop.f32.mrb[10].mxu1  ;;  %v402_v25 = vld [vmem:[#allocation2 + $0xd0] sm:$0xff] }
 0x17e   : > { %v1456_v36 = vpop.f32.mrb[11].mxu0  ;;  %v1504_v38 = vpop.f32.mrb[11].mxu1 }
 0x17f   : > { %v893_v39 = vadd.f32 %v1454_v31, %v380_v27  ;;  %v909_v40 = vadd.f32 %v1502_v32, %v396_v29  ;;  %v1457_v41 = vadd.f32 %v1456_v36, %v1455_v33  ;;  %v1505_v42 = vadd.f32 %v1504_v38, %v1503_v34  ;;  %v387_v31 = vld [vmem:[#allocation2 + $0x58] sm:$0xff] }
 0x180   : > { %v403_v33 = vld [vmem:[#allocation2 + $0xd8] sm:$0xff] }
 0x181   : > { %926 = vst.msk [vmem:[#allocation2 + $0x20] sm:$0xff] %vm921_vm1, %v893_v39  ;;  %942 = vst.msk [vmem:[#allocation2 + $0xa0] sm:$0xff] %vm921_vm1, %v909_v40  ;;  %v894_v43 = vadd.f32 %v1457_v41, %v381_v35  ;;  %v910_v44 = vadd.f32 %v1505_v42, %v397_v37 }
 0x183   : > { %927 = vst.msk [vmem:[#allocation2 + $0x28] sm:$0xff] %vm921_vm1, %v894_v43  ;;  %943 = vst.msk [vmem:[#allocation2 + $0xa8] sm:$0xff] %vm921_vm1, %v910_v44  ;;  %v1458_v45 = vpop.f32.mrb[12].mxu0  ;;  %v1506_v46 = vpop.f32.mrb[12].mxu1  ;;  %v388_v43 = vld [vmem:[#allocation2 + $0x60] sm:$0xff] }
 0x184   : > { %v1459_v48 = vpop.f32.mrb[13].mxu0  ;;  %v1507_v50 = vpop.f32.mrb[13].mxu1 }
 0x185   : > { %v1460_v51 = vadd.f32 %v1459_v48, %v1458_v45  ;;  %v1508_v52 = vadd.f32 %v1507_v50, %v1506_v46  ;;  %v1461_v53 = vpop.f32.mrb[14].mxu0  ;;  %v1509_v54 = vpop.f32.mrb[14].mxu1  ;;  %v404_v45 = vld [vmem:[#allocation2 + $0xe0] sm:$0xff] }
 0x186   : > { %v1462_v56 = vpop.f32.mrb[15].mxu0  ;;  %v1510_v58 = vpop.f32.mrb[15].mxu1 }
 0x187   : > { %v895_v59 = vadd.f32 %v1460_v51, %v382_v47  ;;  %v911_v60 = vadd.f32 %v1508_v52, %v398_v49  ;;  %v1463_v61 = vadd.f32 %v1462_v56, %v1461_v53  ;;  %v1511_v62 = vadd.f32 %v1510_v58, %v1509_v54  ;;  %v389_v51 = vld [vmem:[#allocation2 + $0x68] sm:$0xff] }
 0x188   : > { %v405_v53 = vld [vmem:[#allocation2 + $0xe8] sm:$0xff] }
 0x189   : > { %928 = vst.msk [vmem:[#allocation2 + $0x30] sm:$0xff] %vm921_vm1, %v895_v59  ;;  %944 = vst.msk [vmem:[#allocation2 + $0xb0] sm:$0xff] %vm921_vm1, %v911_v60  ;;  %v896_v63 = vadd.f32 %v1463_v61, %v383_v55  ;;  %v912_v0 = vadd.f32 %v1511_v62, %v399_v57 }
 0x18b   : > { %929 = vst.msk [vmem:[#allocation2 + $0x38] sm:$0xff] %vm921_vm1, %v896_v63  ;;  %945 = vst.msk [vmem:[#allocation2 + $0xb8] sm:$0xff] %vm921_vm1, %v912_v0  ;;  %v1464_v1 = vpop.f32.mrb[16].mxu0  ;;  %v1512_v2 = vpop.f32.mrb[16].mxu1  ;;  %v390_v63 = vld [vmem:[#allocation2 + $0x70] sm:$0xff] }
 0x18c   : > { %v1465_v4 = vpop.f32.mrb[17].mxu0  ;;  %v1513_v6 = vpop.f32.mrb[17].mxu1 }
 0x18d   : > { %v1466_v7 = vadd.f32 %v1465_v4, %v1464_v1  ;;  %v1514_v8 = vadd.f32 %v1513_v6, %v1512_v2  ;;  %v1467_v9 = vpop.f32.mrb[18].mxu0  ;;  %v1515_v10 = vpop.f32.mrb[18].mxu1  ;;  %v406_v1 = vld [vmem:[#allocation2 + $0xf0] sm:$0xff] }
 0x18e   : > { %v1468_v12 = vpop.f32.mrb[19].mxu0  ;;  %v1516_v14 = vpop.f32.mrb[19].mxu1 }
 0x18f   : > { %v897_v15 = vadd.f32 %v1466_v7, %v384_v3  ;;  %v913_v16 = vadd.f32 %v1514_v8, %v400_v5  ;;  %v1469_v17 = vadd.f32 %v1468_v12, %v1467_v9  ;;  %v1517_v18 = vadd.f32 %v1516_v14, %v1515_v10  ;;  %v391_v7 = vld [vmem:[#allocation2 + $0x78] sm:$0xff] }
 0x190   : > { %v407_v9 = vld [vmem:[#allocation2 + $0xf8] sm:$0xff] }
 0x191   : > { %930 = vst.msk [vmem:[#allocation2 + $0x40] sm:$0xff] %vm921_vm1, %v897_v15  ;;  %946 = vst.msk [vmem:[#allocation2 + $0xc0] sm:$0xff] %vm921_vm1, %v913_v16  ;;  %v898_v19 = vadd.f32 %v1469_v17, %v385_v11  ;;  %v914_v20 = vadd.f32 %v1517_v18, %v401_v13 }
 0x193   : > { %931 = vst.msk [vmem:[#allocation2 + $0x48] sm:$0xff] %vm921_vm1, %v898_v19  ;;  %947 = vst.msk [vmem:[#allocation2 + $0xc8] sm:$0xff] %vm921_vm1, %v914_v20  ;;  %v1470_v21 = vpop.f32.mrb[20].mxu0  ;;  %v1518_v22 = vpop.f32.mrb[20].mxu1 }
 0x194   : > { %v1471_v24 = vpop.f32.mrb[21].mxu0  ;;  %v1519_v26 = vpop.f32.mrb[21].mxu1 }
 0x195   : > { %v1472_v27 = vadd.f32 %v1471_v24, %v1470_v21  ;;  %v1520_v28 = vadd.f32 %v1519_v26, %v1518_v22  ;;  %v1473_v29 = vpop.f32.mrb[22].mxu0  ;;  %v1521_v30 = vpop.f32.mrb[22].mxu1 }
 0x196   : > { %v1474_v32 = vpop.f32.mrb[23].mxu0  ;;  %v1522_v34 = vpop.f32.mrb[23].mxu1 }
 0x197   : > { %v899_v35 = vadd.f32 %v1472_v27, %v386_v23  ;;  %v915_v36 = vadd.f32 %v1520_v28, %v402_v25  ;;  %v1475_v37 = vadd.f32 %v1474_v32, %v1473_v29  ;;  %v1523_v38 = vadd.f32 %v1522_v34, %v1521_v30 }
 0x199   : > { %932 = vst.msk [vmem:[#allocation2 + $0x50] sm:$0xff] %vm921_vm1, %v899_v35  ;;  %948 = vst.msk [vmem:[#allocation2 + $0xd0] sm:$0xff] %vm921_vm1, %v915_v36  ;;  %v900_v39 = vadd.f32 %v1475_v37, %v387_v31  ;;  %v916_v40 = vadd.f32 %v1523_v38, %v403_v33 }
 0x19b   : > { %933 = vst.msk [vmem:[#allocation2 + $0x58] sm:$0xff] %vm921_vm1, %v900_v39  ;;  %949 = vst.msk [vmem:[#allocation2 + $0xd8] sm:$0xff] %vm921_vm1, %v916_v40  ;;  %v1476_v41 = vpop.f32.mrb[24].mxu0  ;;  %v1524_v42 = vpop.f32.mrb[24].mxu1 }
 0x19c   : > { %v1477_v44 = vpop.f32.mrb[25].mxu0  ;;  %v1525_v46 = vpop.f32.mrb[25].mxu1 }
 0x19d   : > { %v1478_v47 = vadd.f32 %v1477_v44, %v1476_v41  ;;  %v1526_v48 = vadd.f32 %v1525_v46, %v1524_v42  ;;  %v1479_v49 = vpop.f32.mrb[26].mxu0  ;;  %v1527_v50 = vpop.f32.mrb[26].mxu1 }
 0x19e   : > { %v1480_v52 = vpop.f32.mrb[27].mxu0  ;;  %v1528_v54 = vpop.f32.mrb[27].mxu1 }
 0x19f   : > { %v901_v55 = vadd.f32 %v1478_v47, %v388_v43  ;;  %v917_v56 = vadd.f32 %v1526_v48, %v404_v45  ;;  %v1481_v57 = vadd.f32 %v1480_v52, %v1479_v49  ;;  %v1529_v58 = vadd.f32 %v1528_v54, %v1527_v50 }
 0x1a1   : > { %934 = vst.msk [vmem:[#allocation2 + $0x60] sm:$0xff] %vm921_vm1, %v901_v55  ;;  %950 = vst.msk [vmem:[#allocation2 + $0xe0] sm:$0xff] %vm921_vm1, %v917_v56  ;;  %v902_v59 = vadd.f32 %v1481_v57, %v389_v51  ;;  %v918_v60 = vadd.f32 %v1529_v58, %v405_v53 }
 0x1a3   : > { %935 = vst.msk [vmem:[#allocation2 + $0x68] sm:$0xff] %vm921_vm1, %v902_v59  ;;  %951 = vst.msk [vmem:[#allocation2 + $0xe8] sm:$0xff] %vm921_vm1, %v918_v60  ;;  %v1482_v61 = vpop.f32.mrb[28].mxu0  ;;  %v1530_v62 = vpop.f32.mrb[28].mxu1 }
 0x1a4   : > { %v1483_v0 = vpop.f32.mrb[29].mxu0  ;;  %v1531_v2 = vpop.f32.mrb[29].mxu1 }
 0x1a5   : > { %v1484_v3 = vadd.f32 %v1483_v0, %v1482_v61  ;;  %v1532_v4 = vadd.f32 %v1531_v2, %v1530_v62  ;;  %v1485_v5 = vpop.f32.mrb[30].mxu0  ;;  %v1533_v6 = vpop.f32.mrb[30].mxu1 }
 0x1a6   : > { %v1486_v8 = vpop.f32.mrb[31].mxu0  ;;  %v1534_v10 = vpop.f32.mrb[31].mxu1 }
 0x1a7   : > { %v903_v11 = vadd.f32 %v1484_v3, %v390_v63  ;;  %v919_v12 = vadd.f32 %v1532_v4, %v406_v1  ;;  %v1487_v13 = vadd.f32 %v1486_v8, %v1485_v5  ;;  %v1535_v14 = vadd.f32 %v1534_v10, %v1533_v6 }
 0x1a9   : > { %936 = vst.msk [vmem:[#allocation2 + $0x70] sm:$0xff] %vm921_vm1, %v903_v11  ;;  %952 = vst.msk [vmem:[#allocation2 + $0xf0] sm:$0xff] %vm921_vm1, %v919_v12  ;;  %v904_v15 = vadd.f32 %v1487_v13, %v391_v7  ;;  %v920_v16 = vadd.f32 %v1535_v14, %v407_v9 }
 0x1ab   : > { %937 = vst.msk [vmem:[#allocation2 + $0x78] sm:$0xff] %vm921_vm1, %v904_v15  ;;  %953 = vst.msk [vmem:[#allocation2 + $0xf8] sm:$0xff] %vm921_vm1, %v920_v16 }
 0x1ac PF: > { %p1355_p4 = scmp.ne.s32.totalorder %s1803_s29, 1 }
 0x1ad   : > { %v958_v17 = vld [vmem:[#allocation2] sm:$0xff] (!%p1355_p4)  ;;  %v959_v19 = vld [vmem:[#allocation2 + $0x8] sm:$0xff] (!%p1355_p4)  ;;  %v960_v22 = vld [vmem:[#allocation2 + $0x10] sm:$0xff] (!%p1355_p4)  ;;  %vm1157_vm2 = vcmask (!%p1355_p4), 519168  }
 0x1ae   : > { %957 = sbr.rel (%p1355_p4) target bundleno = 453 (0x1c5), region = 48  ;;  %v2123_v18 = vld [vmem:[%s2248_s4] ss:$0 sm:$0xff] (!%p1355_p4)  ;;  %v961_v23 = vld [vmem:[#allocation2 + $0x18] sm:$0xff] (!%p1355_p4)  ;;  %v963_v28 = vld [vmem:[#allocation2 + $0x28] sm:$0xff] (!%p1355_p4) }
 0x1af   : > { %v997_v20 = vadd.f32 (!%p1355_p4), %v2123_v18, %v958_v17  ;;  %v998_v21 = vadd.f32 (!%p1355_p4), %v2123_v18, %v959_v19  ;;  %v962_v24 = vld [vmem:[#allocation2 + $0x20] sm:$0xff] (!%p1355_p4)  ;;  %v999_v25 = vadd.f32 (!%p1355_p4), %v2123_v18, %v960_v22  ;;  %v1000_v26 = vadd.f32 (!%p1355_p4), %v2123_v18, %v961_v23  ;;  %v964_v29 = vld [vmem:[#allocation2 + $0x30] sm:$0xff] (!%p1355_p4)  ;;  %v965_v30 = vld [vmem:[#allocation2 + $0x38] sm:$0xff] (!%p1355_p4) }
 0x1b0   : > { %v1001_v27 = vadd.f32 (!%p1355_p4), %v2123_v18, %v962_v24  ;;  %v1002_v33 = vadd.f32 (!%p1355_p4), %v2123_v18, %v963_v28  ;;  %v1003_v34 = vadd.f32 (!%p1355_p4), %v2123_v18, %v964_v29  ;;  %v966_v35 = vld [vmem:[#allocation2 + $0x40] sm:$0xff] (!%p1355_p4)  ;;  %v967_v36 = vld [vmem:[#allocation2 + $0x48] sm:$0xff] (!%p1355_p4)  ;;  %v968_v37 = vld [vmem:[#allocation2 + $0x50] sm:$0xff] (!%p1355_p4)  ;;  %v1004_v41 = vadd.f32 (!%p1355_p4), %v2123_v18, %v965_v30 }
 0x1b1   : > { %v1392_v31 = vpack.c.bf16 (!%p1355_p4), %v997_v20, %v997_v20  ;;  %v1393_v32 = vpack.c.bf16 (!%p1355_p4), %v998_v21, %v998_v21  ;;  %v1394_v38 = vpack.c.bf16 (!%p1355_p4), %v999_v25, %v999_v25  ;;  %v1395_v39 = vpack.c.bf16 (!%p1355_p4), %v1000_v26, %v1000_v26  ;;  %v969_v42 = vld [vmem:[#allocation2 + $0x58] sm:$0xff] (!%p1355_p4)  ;;  %v970_v43 = vld [vmem:[#allocation2 + $0x60] sm:$0xff] (!%p1355_p4)  ;;  %v971_v44 = vld [vmem:[#allocation2 + $0x68] sm:$0xff] (!%p1355_p4) }
 0x1b2   : > { %v1396_v40 = vpack.c.bf16 (!%p1355_p4), %v1001_v27, %v1001_v27  ;;  %v1397_v45 = vpack.c.bf16 (!%p1355_p4), %v1002_v33, %v1002_v33  ;;  %v1398_v46 = vpack.c.bf16 (!%p1355_p4), %v1003_v34, %v1003_v34  ;;  %v1005_v47 = vadd.f32 (!%p1355_p4), %v2123_v18, %v966_v35  ;;  %v972_v49 = vld [vmem:[#allocation2 + $0x70] sm:$0xff] (!%p1355_p4)  ;;  %v973_v50 = vld [vmem:[#allocation2 + $0x78] sm:$0xff] (!%p1355_p4)  ;;  %v974_v55 = vld [vmem:[#allocation2 + $0x80] sm:$0xff] (!%p1355_p4) }
 0x1b3   : > { %1158 = vst.msk [vmem:[%s1997_s13] sm:$0xf] (!%p1355_p4), %vm1157_vm2, %v1392_v31  ;;  %1159 = vst.msk [vmem:[%s1997_s13 + $0x4] sm:$0xf] (!%p1355_p4), %vm1157_vm2, %v1393_v32  ;;  %v1006_v48 = vadd.f32 (!%p1355_p4), %v2123_v18, %v967_v36  ;;  %v1399_v51 = vpack.c.bf16 (!%p1355_p4), %v1004_v41, %v1004_v41  ;;  %v1007_v52 = vadd.f32 (!%p1355_p4), %v2123_v18, %v968_v37  ;;  %v975_v56 = vld [vmem:[#allocation2 + $0x88] sm:$0xff] (!%p1355_p4)  ;;  %v976_v61 = vld [vmem:[#allocation2 + $0x90] sm:$0xff] (!%p1355_p4) }
 0x1b4   : > { %1160 = vst.msk [vmem:[%s1997_s13 + $0x8] sm:$0xf] (!%p1355_p4), %vm1157_vm2, %v1394_v38  ;;  %1161 = vst.msk [vmem:[%s1997_s13 + $0xc] sm:$0xf] (!%p1355_p4), %vm1157_vm2, %v1395_v39  ;;  %v1008_v53 = vadd.f32 (!%p1355_p4), %v2123_v18, %v969_v42  ;;  %v1009_v54 = vadd.f32 (!%p1355_p4), %v2123_v18, %v970_v43  ;;  %v1400_v57 = vpack.c.bf16 (!%p1355_p4), %v1005_v47, %v1005_v47  ;;  %v977_v62 = vld [vmem:[#allocation2 + $0x98] sm:$0xff] (!%p1355_p4)  ;;  %v978_v63 = vld [vmem:[#allocation2 + $0xa0] sm:$0xff] (!%p1355_p4) }
 0x1b5   : > { %1162 = vst.msk [vmem:[%s1997_s13 + $0x10] sm:$0xf] %vm1157_vm2, %v1396_v40  ;;  %1163 = vst.msk [vmem:[%s1997_s13 + $0x14] sm:$0xf] %vm1157_vm2, %v1397_v45  ;;  %v1401_v58 = vpack.c.bf16 %v1006_v48, %v1006_v48  ;;  %v1010_v59 = vadd.f32 %v2123_v18, %v971_v44  ;;  %v1011_v60 = vadd.f32 %v2123_v18, %v972_v49  ;;  %v979_v4 = vld [vmem:[#allocation2 + $0xa8] sm:$0xff]  ;;  %v980_v5 = vld [vmem:[#allocation2 + $0xb0] sm:$0xff] }
 0x1b6   : > { %1164 = vst.msk [vmem:[%s1997_s13 + $0x18] sm:$0xf] %vm1157_vm2, %v1398_v46  ;;  %1165 = vst.msk [vmem:[%s1997_s13 + $0x1c] sm:$0xf] %vm1157_vm2, %v1399_v51  ;;  %v1402_v0 = vpack.c.bf16 %v1007_v52, %v1007_v52  ;;  %v1403_v1 = vpack.c.bf16 %v1008_v53, %v1008_v53  ;;  %v1404_v2 = vpack.c.bf16 %v1009_v54, %v1009_v54  ;;  %v981_v10 = vld [vmem:[#allocation2 + $0xb8] sm:$0xff]  ;;  %v982_v15 = vld [vmem:[#allocation2 + $0xc0] sm:$0xff] }
 0x1b7   : > { %v1012_v3 = vadd.f32 %v2123_v18, %v973_v50  ;;  %1166 = vst.msk [vmem:[%s1997_s13 + $0x20] sm:$0xf] %vm1157_vm2, %v1400_v57  ;;  %1167 = vst.msk [vmem:[%s1997_s13 + $0x24] sm:$0xf] %vm1157_vm2, %v1401_v58  ;;  %v1405_v6 = vpack.c.bf16 %v1010_v59, %v1010_v59  ;;  %v1406_v7 = vpack.c.bf16 %v1011_v60, %v1011_v60  ;;  %v983_v16 = vld [vmem:[#allocation2 + $0xc8] sm:$0xff]  ;;  %v984_v22 = vld [vmem:[#allocation2 + $0xd0] sm:$0xff] }
 0x1b8   : > { %v1013_v8 = vadd.f32 %v2123_v18, %v974_v55  ;;  %v1014_v9 = vadd.f32 %v2123_v18, %v975_v56  ;;  %1168 = vst.msk [vmem:[%s1997_s13 + $0x28] sm:$0xf] %vm1157_vm2, %v1402_v0  ;;  %1169 = vst.msk [vmem:[%s1997_s13 + $0x2c] sm:$0xf] %vm1157_vm2, %v1403_v1  ;;  %v1015_v12 = vadd.f32 %v2123_v18, %v976_v61  ;;  %v985_v23 = vld [vmem:[#allocation2 + $0xd8] sm:$0xff]  ;;  %v986_v24 = vld [vmem:[#allocation2 + $0xe0] sm:$0xff] }
 0x1b9   : > { %1170 = vst.msk [vmem:[%s1997_s13 + $0x30] sm:$0xf] %vm1157_vm2, %v1404_v2  ;;  %v1407_v11 = vpack.c.bf16 %v1012_v3, %v1012_v3  ;;  %v1016_v13 = vadd.f32 %v2123_v18, %v977_v62  ;;  %v1017_v14 = vadd.f32 %v2123_v18, %v978_v63  ;;  %1171 = vst.msk [vmem:[%s1997_s13 + $0x34] sm:$0xf] %vm1157_vm2, %v1405_v6  ;;  %v987_v29 = vld [vmem:[#allocation2 + $0xe8] sm:$0xff]  ;;  %v988_v30 = vld [vmem:[#allocation2 + $0xf0] sm:$0xff] }
 0x1ba   : > { %1172 = vst.msk [vmem:[%s1997_s13 + $0x38] sm:$0xf] %vm1157_vm2, %v1406_v7  ;;  %v1408_v17 = vpack.c.bf16 %v1013_v8, %v1013_v8  ;;  %v1409_v19 = vpack.c.bf16 %v1014_v9, %v1014_v9  ;;  %v1018_v20 = vadd.f32 %v2123_v18, %v979_v4  ;;  %v1019_v21 = vadd.f32 %v2123_v18, %v980_v5  ;;  %v989_v35 = vld [vmem:[#allocation2 + $0xf8] sm:$0xff] }
 0x1bb   : > { %1173 = vst.msk [vmem:[%s1997_s13 + $0x3c] sm:$0xf] %vm1157_vm2, %v1407_v11  ;;  %v1410_v25 = vpack.c.bf16 %v1015_v12, %v1015_v12  ;;  %v1411_v26 = vpack.c.bf16 %v1016_v13, %v1016_v13  ;;  %v1412_v27 = vpack.c.bf16 %v1017_v14, %v1017_v14  ;;  %v1020_v28 = vadd.f32 %v2123_v18, %v981_v10 }
 0x1bc   : > { %1174 = vst.msk [vmem:[%s1997_s13 + $0x40] sm:$0xf] %vm1157_vm2, %v1408_v17  ;;  %1175 = vst.msk [vmem:[%s1997_s13 + $0x44] sm:$0xf] %vm1157_vm2, %v1409_v19  ;;  %v1413_v31 = vpack.c.bf16 %v1018_v20, %v1018_v20  ;;  %v1414_v32 = vpack.c.bf16 %v1019_v21, %v1019_v21  ;;  %v1021_v33 = vadd.f32 %v2123_v18, %v982_v15 }
 0x1bd   : > { %v1022_v34 = vadd.f32 %v2123_v18, %v983_v16  ;;  %1176 = vst.msk [vmem:[%s1997_s13 + $0x48] sm:$0xf] %vm1157_vm2, %v1410_v25  ;;  %1177 = vst.msk [vmem:[%s1997_s13 + $0x4c] sm:$0xf] %vm1157_vm2, %v1411_v26  ;;  %v1415_v36 = vpack.c.bf16 %v1020_v28, %v1020_v28  ;;  %v1023_v37 = vadd.f32 %v2123_v18, %v984_v22 }
 0x1be   : > { %1178 = vst.msk [vmem:[%s1997_s13 + $0x50] sm:$0xf] %vm1157_vm2, %v1412_v27  ;;  %v1024_v38 = vadd.f32 %v2123_v18, %v985_v23  ;;  %v1025_v39 = vadd.f32 %v2123_v18, %v986_v24  ;;  %1179 = vst.msk [vmem:[%s1997_s13 + $0x54] sm:$0xf] %vm1157_vm2, %v1413_v31  ;;  %v1416_v40 = vpack.c.bf16 %v1021_v33, %v1021_v33 }
 0x1bf   : > { %1180 = vst.msk [vmem:[%s1997_s13 + $0x58] sm:$0xf] %vm1157_vm2, %v1414_v32  ;;  %v1417_v41 = vpack.c.bf16 %v1022_v34, %v1022_v34  ;;  %v1026_v42 = vadd.f32 %v2123_v18, %v987_v29  ;;  %v1027_v43 = vadd.f32 %v2123_v18, %v988_v30  ;;  %1181 = vst.msk [vmem:[%s1997_s13 + $0x5c] sm:$0xf] %vm1157_vm2, %v1415_v36 }
 0x1c0   : > { %v1418_v44 = vpack.c.bf16 %v1023_v37, %v1023_v37  ;;  %v1419_v45 = vpack.c.bf16 %v1024_v38, %v1024_v38  ;;  %v1420_v46 = vpack.c.bf16 %v1025_v39, %v1025_v39  ;;  %v1028_v47 = vadd.f32 %v2123_v18, %v989_v35  ;;  %1182 = vst.msk [vmem:[%s1997_s13 + $0x60] sm:$0xf] %vm1157_vm2, %v1416_v40 }
 0x1c1   : > { %1183 = vst.msk [vmem:[%s1997_s13 + $0x64] sm:$0xf] %vm1157_vm2, %v1417_v41  ;;  %v1421_v48 = vpack.c.bf16 %v1026_v42, %v1026_v42  ;;  %v1422_v49 = vpack.c.bf16 %v1027_v43, %v1027_v43 }
 0x1c2   : > { %1184 = vst.msk [vmem:[%s1997_s13 + $0x68] sm:$0xf] %vm1157_vm2, %v1418_v44  ;;  %1185 = vst.msk [vmem:[%s1997_s13 + $0x6c] sm:$0xf] %vm1157_vm2, %v1419_v45  ;;  %v1423_v50 = vpack.c.bf16 %v1028_v47, %v1028_v47 }
 0x1c3   : > { %1186 = vst.msk [vmem:[%s1997_s13 + $0x70] sm:$0xf] %vm1157_vm2, %v1420_v46  ;;  %1187 = vst.msk [vmem:[%s1997_s13 + $0x74] sm:$0xf] %vm1157_vm2, %v1421_v48 }
 0x1c4   : > { %1188 = vst.msk [vmem:[%s1997_s13 + $0x78] sm:$0xf] %vm1157_vm2, %v1422_v49  ;;  %1189 = vst.msk [vmem:[%s1997_s13 + $0x7c] sm:$0xf] %vm1157_vm2, %v1423_v50 }
 0x1c5 PF: > { %s28_s8 = sadd.s32 1, %s1819_s8   ;;  %s2256_s1 = smov %s1795_s27 }
 0x1c6   : > { %p25_p5 = scmp.ge.s32.totalorder %s28_s8, 6   ;;  %s2257_s27 = smov %s1799_s28 }
 0x1c7   : > { %s2258_s28 = smov %s1937_s15  ;;  %s2259_s29 = smov %s1811_s6 }
 0x1c8   : > { %s2260_s30 = smov %s1815_s7  ;;  %s2261_s6 = smov %s2264_s9 }
 0x1c9   : > { %s2262_s7 = smov %s2268_s10  ;;  %27 = sbr.rel (!%p25_p5) target bundleno = 30 (0x1e), region = 87 }
 0x1d0   :  { %1212 = vsyncpa [#allocation7], 1 }
 0x1d1   :  { %1214 = vsyncpa [#allocation7 + $0x1], 1 }

</bundles_post_ra>
